<compile_context>
chip_gen: v5e
topology: v5e:2x2
jax: 0.10.0
libtpu: 0.0.40
codegen_flags: <defaults>
</compile_context>

<pallas_src>
import functools

import jax
import jax.numpy as jnp
from jax.experimental import pallas as pl
from jax.experimental.pallas import tpu as pltpu


def _basic_block_kernel(x_ref, scale_ref, shift_ref, wb_ref, p_ref, out_ref,
                        *, TH, H):
    # x_ref:     (1, H+2, (W+2)*C)  spatially padded input, channels folded on lanes
    # scale_ref: (1, (W+2)*C)       BN scale per folded lane (0 on the W halo)
    # shift_ref: (1, (W+2)*C)       BN shift per folded lane (0 on the W halo)
    # wb_ref:    (3, (W+2)*C, W*(C+G))  banded 3x3-conv weights, one band per dy
    # p_ref:     ((W+2)*C, W*(C+G))     0/1 routing matrix for the concat passthrough
    # out_ref:   (1, TH, W*(C+G))       fused (x ++ conv) output strip, lane-dense
    s = pl.program_id(1)
    row0 = pl.multiple_of(s * TH, TH)          # first padded row of this strip

    # Strip with a 1-row halo on each side: (TH+2, (W+2)*C).
    xs = x_ref[0, pl.ds(row0, TH + 2), :].astype(jnp.float32)

    # BatchNorm + ReLU.  W-halo lanes have scale = shift = 0, so they stay 0.
    ys = jnp.maximum(xs * scale_ref[...] + shift_ref[...], 0.0)
    # Zero rows that correspond to the H zero-padding (first / last strip only).
    prow = row0 + jax.lax.broadcasted_iota(jnp.int32, (TH + 2, 1), 0)
    ys = jnp.where((prow >= 1) & (prow <= H), ys, 0.0)

    # Fused concat: route raw input channels into out[..., :C] via a 0/1 matmul
    # (keeps the whole output lane-dense; MXU has huge slack at these sizes).
    acc = jnp.dot(xs[1:TH + 1, :], p_ref[...],
                  preferred_element_type=jnp.float32)
    # 3x3 conv (padding handled by the zeroed halo) as 3 row-shifted matmuls
    # against the banded weights: K = (W+2)*C instead of 9 tiny K=C dots.
    for dy in range(3):
        acc = acc + jnp.dot(ys[dy:dy + TH, :], wb_ref[dy],
                            preferred_element_type=jnp.float32)

    out_ref[0] = acc.astype(out_ref.dtype)


def basic_block_forward(x_nchw, gamma, beta, conv_w, eps=1e-5):
    """BasicBlock.forward.  x_nchw: (N, C, H, W); conv_w: (G, C, 3, 3)."""
    N, C, H, W = x_nchw.shape
    G = conv_w.shape[0]
    CG = C + G
    Wp = (W + 2) * C

    TH = 8 if H % 8 == 0 else H              # row-strip height (sublane aligned)
    S = H // TH

    # ---- glue: NCHW -> NHWC, spatial pad, fold channels onto the lane axis ----
    x_nhwc = jnp.transpose(x_nchw, (0, 2, 3, 1))
    xpad_f = jnp.pad(x_nhwc, ((0, 0), (1, 1), (1, 1), (0, 0))).reshape(
        N, H + 2, Wp)

    # ---- BN training-mode batch stats (full batch -> tiling-safe) ----
    xf = x_nhwc.astype(jnp.float32)
    mean = jnp.mean(xf, axis=(0, 1, 2))
    var = jnp.mean(jnp.square(xf - mean), axis=(0, 1, 2))      # biased variance
    scale_c = gamma.astype(jnp.float32) * jax.lax.rsqrt(var + eps)
    shift_c = beta.astype(jnp.float32) - mean * scale_c
    zeros_c = jnp.zeros((C,), jnp.float32)
    scale_f = jnp.concatenate([zeros_c, jnp.tile(scale_c, W), zeros_c]
                              ).reshape(1, Wp)
    shift_f = jnp.concatenate([zeros_c, jnp.tile(shift_c, W), zeros_c]
                              ).reshape(1, Wp)

    # ---- banded conv weights:  wb[dy][(w+dx)*C + c, w*CG + C + g] = W[g,c,dy,dx]
    w_t = jnp.transpose(conv_w, (2, 3, 1, 0)).astype(jnp.float32)   # (3,3,C,G)
    wb_list = []
    for dy in range(3):
        band = jnp.zeros((W + 2, C, W, CG), jnp.float32)
        for dx in range(3):
            eye = jnp.eye(W + 2, W, k=-dx, dtype=jnp.float32)       # [w+dx, w]=1
            wtap = jnp.pad(w_t[dy, dx], ((0, 0), (C, 0)))           # (C, CG)
            band = band + jnp.einsum('vw,cj->vcwj', eye, wtap)
        wb_list.append(band.reshape(Wp, W * CG))
    wb = jnp.stack(wb_list, axis=0)                                  # (3, Wp, W*CG)
    # ---- passthrough routing:  p[(w+1)*C + c, w*CG + c] = 1 ----
    p_route = jnp.einsum(
        'vw,cj->vcwj', jnp.eye(W + 2, W, k=-1, dtype=jnp.float32),
        jnp.pad(jnp.eye(C, dtype=jnp.float32), ((0, 0), (0, G)))
    ).reshape(Wp, W * CG)

    kernel = functools.partial(_basic_block_kernel, TH=TH, H=H)

    out_f = pl.pallas_call(
        kernel,
        out_shape=jax.ShapeDtypeStruct((N, H, W * CG), x_nchw.dtype),
        grid=(N, S),
        in_specs=[
            # full padded image per batch element (re-used across row strips)
            pl.BlockSpec((1, H + 2, Wp), lambda n, s: (n, 0, 0)),
            pl.BlockSpec((1, Wp), lambda n, s: (0, 0)),
            pl.BlockSpec((1, Wp), lambda n, s: (0, 0)),
            pl.BlockSpec((3, Wp, W * CG), lambda n, s: (0, 0, 0)),
            pl.BlockSpec((Wp, W * CG), lambda n, s: (0, 0)),
        ],
        out_specs=pl.BlockSpec((1, TH, W * CG), lambda n, s: (n, s, 0)),
        compiler_params=pltpu.CompilerParams(
            dimension_semantics=("parallel", "parallel"),
            vmem_limit_bytes=32 * 1024 * 1024),
    )(xpad_f, scale_f, shift_f, wb, p_route)

    # ---- glue: unfold lanes and return NCHW (== torch.cat((x, conv), dim=1)) ----
    return jnp.transpose(out_f.reshape(N, H, W, CG), (0, 3, 1, 2))


if __name__ == "__main__":
    key = jax.random.PRNGKey(0)
    k_x, k_g, k_b, k_w = jax.random.split(key, 4)

    # Small shapes consistent with the module: inplanes=4, growthRate=12.
    N, C, H, W = 2, 4, 16, 16
    growth_rate = 12

    x = jax.random.normal(k_x, (N, C, H, W), jnp.float32)
    gamma = 1.0 + 0.1 * jax.random.normal(k_g, (C,), jnp.float32)
    beta = 0.1 * jax.random.normal(k_b, (C,), jnp.float32)
    fan_in = C * 3 * 3
    bound = 1.0 / (fan_in ** 0.5)
    conv_w = jax.random.uniform(k_w, (growth_rate, C, 3, 3), jnp.float32,
                                minval=-bound, maxval=bound)

    fwd = jax.jit(basic_block_forward)
    out = fwd(x, gamma, beta, conv_w)
    jax.block_until_ready(out)
    assert out.shape == (N, C + growth_rate, H, W), out.shape
    assert out.dtype == jnp.float32

    # Pure-JAX reference (same training-mode BN semantics) as a sanity check.
    xh = jnp.transpose(x, (0, 2, 3, 1)).astype(jnp.float32)
    m = jnp.mean(xh, axis=(0, 1, 2))
    v = jnp.mean(jnp.square(xh - m), axis=(0, 1, 2))
    y = jnp.maximum((xh - m) * jax.lax.rsqrt(v + 1e-5) * gamma + beta, 0.0)
    conv_ref = jax.lax.conv_general_dilated(
        y, jnp.transpose(conv_w, (2, 3, 1, 0)), window_strides=(1, 1),
        padding=((1, 1), (1, 1)), dimension_numbers=('NHWC', 'HWIO', 'NHWC'))
    ref = jnp.concatenate([x, jnp.transpose(conv_ref, (0, 3, 1, 2))], axis=1)
    # Loose tolerance: both sides may use reduced-precision MXU passes for f32.
    err = float(jnp.max(jnp.abs(out - ref)))
    assert err < 5e-2, f"max abs err {err}"

    print("KERNEL_OK")
</pallas_src>

<mosaic_0001>
module attributes {stable_mosaic.version = 11 : i64} {
  func.func @_basic_block_kernel(%arg0: i32, %arg1: i32, %arg2: memref<1x18x72xf32, #tpu.memory_space<vmem>>, %arg3: memref<1x72xf32, #tpu.memory_space<vmem>>, %arg4: memref<1x72xf32, #tpu.memory_space<vmem>>, %arg5: memref<3x72x256xf32, #tpu.memory_space<vmem>>, %arg6: memref<72x256xf32, #tpu.memory_space<vmem>>, %arg7: memref<1x8x256xf32, #tpu.memory_space<vmem>>) attributes {dimension_semantics = [#tpu.dimension_semantics<parallel>, #tpu.dimension_semantics<parallel>], iteration_bounds = array<i64: 2, 2>, scalar_prefetch = 0 : i64, scratch_operands = 0 : i64, tpu.core_type = #tpu.core_type<tc>, window_params = [{transform_indices = @transform_0, window_bounds = array<i64: 1, 18, 72>}, {pipeline_mode = #tpu.pipeline_mode<synchronous>, transform_indices = @transform_1, window_bounds = array<i64: 1, 72>}, {pipeline_mode = #tpu.pipeline_mode<synchronous>, transform_indices = @transform_2, window_bounds = array<i64: 1, 72>}, {pipeline_mode = #tpu.pipeline_mode<synchronous>, transform_indices = @transform_3, window_bounds = array<i64: 3, 72, 256>}, {pipeline_mode = #tpu.pipeline_mode<synchronous>, transform_indices = @transform_4, window_bounds = array<i64: 72, 256>}, {transform_indices = @transform_5, window_bounds = array<i64: 1, 8, 256>}]} {
    %c8_i32 = arith.constant 8 : i32
    %0 = arith.muli %arg1, %c8_i32 : i32
    %1 = tpu.assume_multiple %0, 8 : i32
    %c0 = arith.constant 0 : index
    %2 = arith.index_cast %1 : i32 to index
    %c0_0 = arith.constant 0 : index
    %3 = vector.load %arg2[%c0, %2, %c0_0] : memref<1x18x72xf32, #tpu.memory_space<vmem>>, vector<1x10x72xf32>
    %4 = vector.shape_cast %3 : vector<1x10x72xf32> to vector<10x72xf32>
    %c0_1 = arith.constant 0 : index
    %c0_2 = arith.constant 0 : index
    %5 = vector.load %arg3[%c0_1, %c0_2] : memref<1x72xf32, #tpu.memory_space<vmem>>, vector<1x72xf32>
    %6 = vector.broadcast %5 : vector<1x72xf32> to vector<10x72xf32>
    %7 = arith.mulf %4, %6 : vector<10x72xf32>
    %c0_3 = arith.constant 0 : index
    %c0_4 = arith.constant 0 : index
    %8 = vector.load %arg4[%c0_3, %c0_4] : memref<1x72xf32, #tpu.memory_space<vmem>>, vector<1x72xf32>
    %9 = vector.broadcast %8 : vector<1x72xf32> to vector<10x72xf32>
    %10 = arith.addf %7, %9 : vector<10x72xf32>
    %cst = arith.constant 0.000000e+00 : f32
    %11 = vector.broadcast %cst : f32 to vector<10x72xf32>
    %12 = arith.maximumf %10, %11 : vector<10x72xf32>
    %13 = tpu.iota {dimensions = array<i32: 0>} : vector<10x1xi32>
    %14 = vector.broadcast %1 : i32 to vector<10x1xi32>
    %15 = arith.addi %14, %13 : vector<10x1xi32>
    %c1_i32 = arith.constant 1 : i32
    %16 = vector.broadcast %c1_i32 : i32 to vector<10x1xi32>
    %17 = arith.cmpi sge, %15, %16 : vector<10x1xi32>
    %c16_i32 = arith.constant 16 : i32
    %18 = vector.broadcast %c16_i32 : i32 to vector<10x1xi32>
    %19 = arith.cmpi sle, %15, %18 : vector<10x1xi32>
    %20 = arith.andi %17, %19 : vector<10x1xi1>
    %cst_5 = arith.constant 0.000000e+00 : f32
    %21 = vector.shape_cast %20 : vector<10x1xi1> to vector<10x1xi1>
    %22 = vector.broadcast %21 : vector<10x1xi1> to vector<10x72xi1>
    %23 = vector.broadcast %cst_5 : f32 to vector<10x72xf32>
    %24 = arith.select %22, %12, %23 : vector<10x72xi1>, vector<10x72xf32>
    %25 = vector.extract_strided_slice %4 {offsets = [1, 0], sizes = [8, 72], strides = [1, 1]} : vector<10x72xf32> to vector<8x72xf32>
    %c0_6 = arith.constant 0 : index
    %c0_7 = arith.constant 0 : index
    %26 = vector.load %arg6[%c0_6, %c0_7] : memref<72x256xf32, #tpu.memory_space<vmem>>, vector<72x256xf32>
    %cst_8 = arith.constant dense<0.000000e+00> : vector<8x256xf32>
    %27 = tpu.matmul %25, %26, %cst_8 {dimension_numbers = #tpu.dot_dimension_numbers<[1], [0], [0], [1], [0, 0, 1, 1], [], []>} : vector<8x72xf32>, vector<72x256xf32>, vector<8x256xf32> -> vector<8x256xf32>
    %28 = vector.extract_strided_slice %24 {offsets = [0, 0], sizes = [8, 72], strides = [1, 1]} : vector<10x72xf32> to vector<8x72xf32>
    %c0_9 = arith.constant 0 : index
    %c0_10 = arith.constant 0 : index
    %c0_11 = arith.constant 0 : index
    %29 = vector.load %arg5[%c0_9, %c0_10, %c0_11] : memref<3x72x256xf32, #tpu.memory_space<vmem>>, vector<1x72x256xf32>
    %30 = vector.shape_cast %29 : vector<1x72x256xf32> to vector<72x256xf32>
    %cst_12 = arith.constant dense<0.000000e+00> : vector<8x256xf32>
    %31 = tpu.matmul %28, %30, %cst_12 {dimension_numbers = #tpu.dot_dimension_numbers<[1], [0], [0], [1], [0, 0, 1, 1], [], []>} : vector<8x72xf32>, vector<72x256xf32>, vector<8x256xf32> -> vector<8x256xf32>
    %32 = arith.addf %27, %31 : vector<8x256xf32>
    %33 = vector.extract_strided_slice %24 {offsets = [1, 0], sizes = [8, 72], strides = [1, 1]} : vector<10x72xf32> to vector<8x72xf32>
    %c1 = arith.constant 1 : index
    %c0_13 = arith.constant 0 : index
    %c0_14 = arith.constant 0 : index
    %34 = vector.load %arg5[%c1, %c0_13, %c0_14] : memref<3x72x256xf32, #tpu.memory_space<vmem>>, vector<1x72x256xf32>
    %35 = vector.shape_cast %34 : vector<1x72x256xf32> to vector<72x256xf32>
    %cst_15 = arith.constant dense<0.000000e+00> : vector<8x256xf32>
    %36 = tpu.matmul %33, %35, %cst_15 {dimension_numbers = #tpu.dot_dimension_numbers<[1], [0], [0], [1], [0, 0, 1, 1], [], []>} : vector<8x72xf32>, vector<72x256xf32>, vector<8x256xf32> -> vector<8x256xf32>
    %37 = arith.addf %32, %36 : vector<8x256xf32>
    %38 = vector.extract_strided_slice %24 {offsets = [2, 0], sizes = [8, 72], strides = [1, 1]} : vector<10x72xf32> to vector<8x72xf32>
    %c2 = arith.constant 2 : index
    %c0_16 = arith.constant 0 : index
    %c0_17 = arith.constant 0 : index
    %39 = vector.load %arg5[%c2, %c0_16, %c0_17] : memref<3x72x256xf32, #tpu.memory_space<vmem>>, vector<1x72x256xf32>
    %40 = vector.shape_cast %39 : vector<1x72x256xf32> to vector<72x256xf32>
    %cst_18 = arith.constant dense<0.000000e+00> : vector<8x256xf32>
    %41 = tpu.matmul %38, %40, %cst_18 {dimension_numbers = #tpu.dot_dimension_numbers<[1], [0], [0], [1], [0, 0, 1, 1], [], []>} : vector<8x72xf32>, vector<72x256xf32>, vector<8x256xf32> -> vector<8x256xf32>
    %42 = arith.addf %37, %41 : vector<8x256xf32>
    %c0_19 = arith.constant 0 : index
    %c0_20 = arith.constant 0 : index
    %c0_21 = arith.constant 0 : index
    %43 = vector.load %arg7[%c0_19, %c0_20, %c0_21] : memref<1x8x256xf32, #tpu.memory_space<vmem>>, vector<1x8x256xf32>
    %44 = vector.shape_cast %43 : vector<1x8x256xf32> to vector<8x256xf32>
    %45 = vector.shape_cast %42 : vector<8x256xf32> to vector<1x8x256xf32>
    tpu.vector_store %arg7[%c0_19, %c0_20, %c0_21], %45 {strides = array<i32>} : memref<1x8x256xf32, #tpu.memory_space<vmem>>, vector<1x8x256xf32>,
    return
  }
  func.func @transform_0(%arg0: i32, %arg1: i32) -> (i32, i32, i32) {
    %c0_i32 = arith.constant 0 : i32
    %c0_i32_0 = arith.constant 0 : i32
    %c0_i32_1 = arith.constant 0 : i32
    return %arg0, %c0_i32, %c0_i32_0 : i32, i32, i32
  }
  func.func @transform_1(%arg0: i32, %arg1: i32) -> (i32, i32) {
    %c0_i32 = arith.constant 0 : i32
    %c0_i32_0 = arith.constant 0 : i32
    %c0_i32_1 = arith.constant 0 : i32
    return %c0_i32, %c0_i32_0 : i32, i32
  }
  func.func @transform_2(%arg0: i32, %arg1: i32) -> (i32, i32) {
    %c0_i32 = arith.constant 0 : i32
    %c0_i32_0 = arith.constant 0 : i32
    %c0_i32_1 = arith.constant 0 : i32
    return %c0_i32, %c0_i32_0 : i32, i32
  }
  func.func @transform_3(%arg0: i32, %arg1: i32) -> (i32, i32, i32) {
    %c0_i32 = arith.constant 0 : i32
    %c0_i32_0 = arith.constant 0 : i32
    %c0_i32_1 = arith.constant 0 : i32
    %c0_i32_2 = arith.constant 0 : i32
    return %c0_i32, %c0_i32_0, %c0_i32_1 : i32, i32, i32
  }
  func.func @transform_4(%arg0: i32, %arg1: i32) -> (i32, i32) {
    %c0_i32 = arith.constant 0 : i32
    %c0_i32_0 = arith.constant 0 : i32
    %c0_i32_1 = arith.constant 0 : i32
    return %c0_i32, %c0_i32_0 : i32, i32
  }
  func.func @transform_5(%arg0: i32, %arg1: i32) -> (i32, i32, i32) {
    %c0_i32 = arith.constant 0 : i32
    %c0_i32_0 = arith.constant 0 : i32
    return %arg0, %arg1, %c0_i32 : i32, i32, i32
  }
}

</mosaic_0001>

<bundles_post_ra>
// kernel: tile.13
= control target key start
LH: loop header
LB: loop body
LE: loop exit
PB: predicated region body
PF: predicated region fallthrough
CT: control target
= control target key end

     0   :  { %s28_s0 = inlined_call_operand.vmem [shape: f32[4], index: 0, kind: input, shape index: {}]   ;;  %s29_s1 = inlined_call_operand.vmem [shape: f32[16,4], index: 1, kind: output, shape index: {}]  }
   0x1   :  { %v4_v0 = vld [vmem:[%s28_s0] ss:$0 sm:$0xff] }
   0x2   :  { %5 = vst [vmem:[%s29_s1] sm:$0xff] %v4_v0 }
   0x3   :  { %8 = vst [vmem:[%s29_s1 + $0x8] sm:$0xff] %v4_v0 }

// kernel: tile.14
= control target key start
LH: loop header
LB: loop body
LE: loop exit
PB: predicated region body
PF: predicated region fallthrough
CT: control target
= control target key end

     0   :  { %s131_s10 = smov 60   ;;  %s132_s11 = smov 52   ;;  %vm3_vm0 = vcmask 31744   ;;  %vm9_vm1 = vcmask 523744   ;;  %vm15_vm2 = vcmask 490944   ;;  %vm21_vm3 = vcmask 458144   ;;  %s207_s0 = inlined_call_operand.vmem [shape: f32[16,4], index: 0, kind: input, shape index: {}]   ;;  %s208_s1 = inlined_call_operand.vmem [shape: f32[64], index: 1, kind: output, shape index: {}]  }
   0x1   :  { %v101_v0 = vld [vmem:[%s207_s0 + $0xf] sm:$0x1]   ;;  %v103_v1 = vld [vmem:[%s207_s0 + $0xd] sm:$0x1]   ;;  %v105_v2 = vld [vmem:[%s207_s0 + $0xb] sm:$0x1]  }
   0x2   :  { %7 = vrot.lane.b32.xlu0 %v101_v0, %s131_s10  ;;  %19 = vrot.lane.b32.xlu1 %v103_v1, %s132_s11  ;;  %s133_s14 = smov 44   ;;  %v102_v3 = vld [vmem:[%s207_s0 + $0xe] sm:$0x1]   ;;  %v104_v4 = vld [vmem:[%s207_s0 + $0xc] sm:$0x1]   ;;  %s134_s19 = smov 56  }
   0x3   :  { %31 = vrot.lane.b32.xlu2 %v105_v2, %s133_s14  ;;  %s135_s20 = smov 48   ;;  %v106_v5 = vld [vmem:[%s207_s0 + $0xa] sm:$0x1]   ;;  %s136_s23 = smov 40   ;;  %v107_v6 = vld [vmem:[%s207_s0 + $0x9] sm:$0x1]  }
   0x4   :  { %v108_v7 = vld [vmem:[%s207_s0 + $0x8] sm:$0x1]   ;;  %s137_s28 = smov 36   ;;  %s138_s29 = smov 32   ;;  %v109_v8 = vld [vmem:[%s207_s0 + $0x7] sm:$0x1]  }
   0x5   :  { %s139_s3 = smov 28   ;;  %v110_v9 = vld [vmem:[%s207_s0 + $0x6] sm:$0x1]   ;;  %v111_v10 = vld [vmem:[%s207_s0 + $0x5] sm:$0x1]   ;;  %s140_s8 = smov 24  }
   0x6   :  { %s141_s9 = smov 20   ;;  %v112_v11 = vld [vmem:[%s207_s0 + $0x4] sm:$0x1]   ;;  %s142_s12 = smov 16   ;;  %v113_v12 = vld [vmem:[%s207_s0 + $0x3] sm:$0x1]  }
   0x7   :  { %v114_v13 = vld [vmem:[%s207_s0 + $0x2] sm:$0x1]   ;;  %s143_s17 = smov 12   ;;  %s144_s18 = smov 8   ;;  %v115_v14 = vld [vmem:[%s207_s0 + $0x1] sm:$0x1]  }
   0x8   :  { %s145_s21 = smov 4   ;;  %v2_v15 = vld [vmem:[%s207_s0] sm:$0x1]   ;;  %vm27_vm4 = vcmask 425344   ;;  %vm33_vm5 = vcmask 392544   ;;  %vm39_vm6 = vcmask 359744  }
   0x9   :  { %4 = vst.msk [vmem:[#allocation0] sm:$0x1] %vm3_vm0, %v2_v15   ;;  %vm45_vm7 = vcmask 326944   ;;  %vm51_vm8 = vcmask 294144   ;;  %vm57_vm9 = vcmask 261344   ;;  %vm63_vm10 = vcmask 228544  }
   0xa   :  { %13 = vrot.lane.b32.xlu0 %v102_v3, %s134_s19  ;;  %25 = vrot.lane.b32.xlu1 %v104_v4, %s135_s20  ;;  %vm69_vm11 = vcmask 195744   ;;  %vm75_vm12 = vcmask 162944   ;;  %vm81_vm13 = vcmask 130144   ;;  %vm87_vm14 = vcmask 97344  }
   0xb   :  { %37 = vrot.lane.b32.xlu2 %v106_v5, %s136_s23  ;;  %vm93_vm15 = vcmask 64544  }
  0x12   :  { %43 = vrot.lane.b32.xlu0 %v107_v6, %s137_s28  ;;  %49 = vrot.lane.b32.xlu1 %v108_v7, %s138_s29 }
  0x13   :  { %55 = vrot.lane.b32.xlu2 %v109_v8, %s139_s3 }
  0x1a   :  { %61 = vrot.lane.b32.xlu0 %v110_v9, %s140_s8  ;;  %67 = vrot.lane.b32.xlu1 %v111_v10, %s141_s9 }
  0x1b   :  { %73 = vrot.lane.b32.xlu2 %v112_v11, %s142_s12 }
  0x22   :  { %79 = vrot.lane.b32.xlu0 %v113_v12, %s143_s17  ;;  %85 = vrot.lane.b32.xlu1 %v114_v13, %s144_s18 }
  0x23   :  { %91 = vrot.lane.b32.xlu2 %v115_v14, %s145_s21 }
  0x5d   :  { %v32_v16 = vpop.permute.xlu2 %31  }
  0x65   :  { %v38_v17 = vpop.permute.xlu2 %37  }
  0x6d   :  { %v56_v18 = vpop.permute.xlu2 %55  }
  0x74   :  { %v8_v19 = vpop.permute.xlu0 %7   ;;  %v20_v20 = vpop.permute.xlu1 %19  }
  0x75   :  { %10 = vst.msk [vmem:[#allocation0] sm:$0x1] %vm9_vm1, %v8_v19   ;;  %v74_v21 = vpop.permute.xlu2 %73  }
  0x7c   :  { %v14_v22 = vpop.permute.xlu0 %13   ;;  %v26_v23 = vpop.permute.xlu1 %25  }
  0x7d   :  { %16 = vst.msk [vmem:[#allocation0] sm:$0x1] %vm15_vm2, %v14_v22   ;;  %v92_v24 = vpop.permute.xlu2 %91  }
  0x7e   :  { %22 = vst.msk [vmem:[#allocation0] sm:$0x1] %vm21_vm3, %v20_v20  }
  0x7f   :  { %28 = vst.msk [vmem:[#allocation0] sm:$0x1] %vm27_vm4, %v26_v23  }
  0x80   :  { %34 = vst.msk [vmem:[#allocation0] sm:$0x1] %vm33_vm5, %v32_v16  }
  0x81   :  { %40 = vst.msk [vmem:[#allocation0] sm:$0x1] %vm39_vm6, %v38_v17  }
  0x84   :  { %v44_v25 = vpop.permute.xlu0 %43   ;;  %v50_v26 = vpop.permute.xlu1 %49  }
  0x85   :  { %46 = vst.msk [vmem:[#allocation0] sm:$0x1] %vm45_vm7, %v44_v25  }
  0x86   :  { %52 = vst.msk [vmem:[#allocation0] sm:$0x1] %vm51_vm8, %v50_v26  }
  0x87   :  { %58 = vst.msk [vmem:[#allocation0] sm:$0x1] %vm57_vm9, %v56_v18  }
  0x8c   :  { %v62_v27 = vpop.permute.xlu0 %61   ;;  %v68_v28 = vpop.permute.xlu1 %67  }
  0x8d   :  { %64 = vst.msk [vmem:[#allocation0] sm:$0x1] %vm63_vm10, %v62_v27  }
  0x8e   :  { %70 = vst.msk [vmem:[#allocation0] sm:$0x1] %vm69_vm11, %v68_v28  }
  0x8f   :  { %76 = vst.msk [vmem:[#allocation0] sm:$0x1] %vm75_vm12, %v74_v21  }
  0x94   :  { %v80_v29 = vpop.permute.xlu0 %79   ;;  %v86_v30 = vpop.permute.xlu1 %85  }
  0x95   :  { %82 = vst.msk [vmem:[#allocation0] sm:$0x1] %vm81_vm13, %v80_v29  }
  0x96   :  { %88 = vst.msk [vmem:[#allocation0] sm:$0x1] %vm87_vm14, %v86_v30  }
  0x97   :  { %94 = vst.msk [vmem:[#allocation0] sm:$0x1] %vm93_vm15, %v92_v24  }
  0x9e   :  { %v97_v31 = vld [vmem:[#allocation0] sm:$0x1] }
  0x9f   :  { %100 = vst [vmem:[%s208_s1] sm:$0x1] %v97_v31 }

// kernel: basic_block_forward.1
= control target key start
LH: loop header
LB: loop body
LE: loop exit
PB: predicated region body
PF: predicated region fallthrough
CT: control target
= control target key end

     0   :  { %s804_s18 = smov 0   ;;  %s806_s19 = smov 0   ;;  %s1106_s0 = inlined_call_operand.vmem [shape: f32[2,18,72], index: 0, kind: input, shape index: {}]   ;;  %s1107_s1 = inlined_call_operand.vmem [shape: f32[1,72], index: 1, kind: input, shape index: {}]   ;;  %s1108_s2 = inlined_call_operand.vmem [shape: f32[1,72], index: 2, kind: input, shape index: {}]   ;;  %s1109_s3 = inlined_call_operand.vmem [shape: f32[3,72,256], index: 3, kind: input, shape index: {}]   ;;  %s1110_s4 = inlined_call_operand.vmem [shape: f32[72,256], index: 4, kind: input, shape index: {}]   ;;  %s1111_s5 = inlined_call_operand.vmem [shape: f32[2,16,256], index: 5, kind: output, shape index: {}]  }
   0x1   :  { %s808_s20 = smov 0   ;;  %s810_s21 = smov 0  }
   0x2   :  { %s812_s22 = smov 0  }
   0x3 LB: > { %s24_s23 = sadd.s32 1, %s764_s20  ;;  %s27_s24 = sadd.s32 1, %s768_s21  ;;  %s772_s22 = sphi %s812_s22, %s15_s22   ;;  %s768_s21 = sphi %s810_s21, %s1115_s21   ;;  %s764_s20 = sphi %s808_s20, %s1114_s20   ;;  %s760_s19 = sphi %s806_s19, %s1113_s19   ;;  %s756_s18 = sphi %s804_s18, %s1112_s18  }
   0x4   : > { %p25_p0 = scmp.ge.s32.totalorder %s24_s23, 2  ;;  %p639_p1 = scmp.ge.s32.totalorder %s772_s22, 1 }
   0x5   : > { %p201_p2 = scmp.lt.s32.totalorder %s772_s22, 5 }
   0x6   : > { %s1117_s23 = smov (%p25_p0, %s24_s23), 0  ;;  %s1119_s24 = smov (!%p25_p0, %s27_s24), %s768_s21 }
   0x7   : > { %p202_p3 = pnand %p639_p1, %p201_p2  ;;  %p29_p4 = scmp.ge.s32.totalorder %s1119_s24, 2 }
   0x8   : > { %p233_p5 = scmp.lt.s32.totalorder (!%p202_p3), %s760_s19, 1  ;;  %s644_s7 = sshll.u32 (!%p202_p3), %s756_s18, 3 }
   0x9   : > { %s1121_s24 = smov (%p29_p4, %s1119_s24), 0  ;;  %205 = sbr.rel (%p202_p3) target bundleno = 190 (0xbe), region = 40 }
   0xa   : > { %p240_p6 = scmp.lt.s32.totalorder (!%p202_p3), %s756_s18, 1 }
   0xe   : > { %v317_v0 = vld [vmem:[%s1109_s3 + $0x80] sm:$0xff]  ;;  %v318_v1 = vld [vmem:[%s1109_s3 + $0x88] sm:$0xff]  ;;  %v315_v4 = vld [vmem:[%s1109_s3 + $0x70] sm:$0xff]  ;;  %s1123_s19 = smov (!%p233_p5, %s760_s19), 1  ;;  %v265_v24 = vlaneseq  ;;  %v268_v37 = vstv %s644_s7  ;;  %vm365_vm0 = vcmask 1046528   ;;  %vm319_vm5 = vcmask 588800  }
   0xf   : > { %v299_v2 = vld [vmem:[%s1110_s4 + $0x80] sm:$0xff]  ;;  %330 = vmatpush.msra.mxu0 %v317_v0  ;;  %350 = vmatpush.msra.mxu1 %v318_v1  ;;  %v300_v3 = vld [vmem:[%s1110_s4 + $0x88] sm:$0xff]  ;;  %v316_v5 = vld [vmem:[%s1109_s3 + $0x78] sm:$0xff]  ;;  %s691_s29 = smul.u32 24, %s1123_s19  ;;  %vm497_vm8 = vcmask 1045504   ;;  %s1125_s18 = smov (!%p240_p6, %s756_s18), 1 }
  0x10   : > { %378 = vmatpush.msra.mxu2 %v299_v2  ;;  %398 = vmatpush.msra.mxu3 %v300_v3  ;;  %v297_v6 = vld [vmem:[%s1110_s4 + $0x70] sm:$0xff]  ;;  %v298_v7 = vld [vmem:[%s1110_s4 + $0x78] sm:$0xff]  ;;  %v313_v8 = vld [vmem:[%s1109_s3 + $0x60] sm:$0xff]  ;;  %v266_v33 = vshrl.u32 %v265_v24, 7  ;;  %s641_s13 = sshll.u32 %s1125_s18, 1 }
  0x11   : > { %331 = vmatpush.msra.mxu0 %v315_v4  ;;  %351 = vmatpush.msra.mxu1 %v316_v5  ;;  %v314_v9 = vld [vmem:[%s1109_s3 + $0x68] sm:$0xff]  ;;  %v295_v10 = vld [vmem:[%s1110_s4 + $0x60] sm:$0xff]  ;;  %v311_v12 = vld [vmem:[%s1109_s3 + $0x50] sm:$0xff]  ;;  %s237_s6 = scalar_lea.vmem %s1106_s0, %s691_s29 }
  0x12   : > { %v296_v11 = vld [vmem:[%s1110_s4 + $0x68] sm:$0xff]  ;;  %379 = vmatpush.msra.mxu2 %v297_v6  ;;  %399 = vmatpush.msra.mxu3 %v298_v7  ;;  %v312_v13 = vld [vmem:[%s1109_s3 + $0x58] sm:$0xff]  ;;  %v293_v14 = vld [vmem:[%s1110_s4 + $0x50] sm:$0xff]  ;;  %s248_s28 = scalar_lea.vmem %s237_s6, %s644_s7  ;;  %v267_v41 = vadd.s32 8, %v266_v33  ;;  %v269_v48 = vadd.s32 %v268_v37, %v266_v33  ;;  %s642_s6 = sshll.u32 %s1123_s19, 2 }
  0x13   : > { %332 = vmatpush.msra.mxu0 %v313_v8  ;;  %352 = vmatpush.msra.mxu1 %v314_v9  ;;  %v294_v15 = vld [vmem:[%s1110_s4 + $0x58] sm:$0xff]  ;;  %v309_v16 = vld [vmem:[%s1109_s3 + $0x40] sm:$0xff]  ;;  %v310_v17 = vld [vmem:[%s1109_s3 + $0x48] sm:$0xff]  ;;  %s244_s7 = sadd.s32 %s642_s6, %s641_s13 }
  0x14   : > { %380 = vmatpush.msra.mxu2 %v295_v10  ;;  %400 = vmatpush.msra.mxu3 %v296_v11  ;;  %v291_v18 = vld [vmem:[%s1110_s4 + $0x40] sm:$0xff]  ;;  %v292_v19 = vld [vmem:[%s1110_s4 + $0x48] sm:$0xff]  ;;  %v307_v20 = vld [vmem:[%s1109_s3 + $0x30] sm:$0xff]  ;;  %v270_v54 = vadd.s32 %v268_v37, %v267_v41  ;;  %vm271_vm1 = vcmp.ge.s32.totalorder %v269_v48, 1  ;;  %vm273_vm2 = vcmp.le.s32.totalorder %v269_v48, 16  ;;  %s643_s14 = sshll.u32 %s244_s7, 3 }
  0x15   : > { %333 = vmatpush.msra.mxu0 %v311_v12  ;;  %353 = vmatpush.msra.mxu1 %v312_v13  ;;  %v308_v21 = vld [vmem:[%s1109_s3 + $0x38] sm:$0xff]  ;;  %v289_v22 = vld [vmem:[%s1110_s4 + $0x30] sm:$0xff]  ;;  %v305_v25 = vld [vmem:[%s1109_s3 + $0x20] sm:$0xff]  ;;  %s246_s16 = scalar_lea.vmem %s1111_s5, %s643_s14 }
  0x16   : > { %381 = vmatpush.msra.mxu2 %v293_v14  ;;  %401 = vmatpush.msra.mxu3 %v294_v15  ;;  %v290_v23 = vld [vmem:[%s1110_s4 + $0x38] sm:$0xff]  ;;  %v306_v26 = vld [vmem:[%s1109_s3 + $0x28] sm:$0xff]  ;;  %v287_v27 = vld [vmem:[%s1110_s4 + $0x20] sm:$0xff]  ;;  %vm272_vm3 = vcmp.ge.s32.totalorder %v270_v54, 1  ;;  %vm274_vm4 = vcmp.le.s32.totalorder %v270_v54, 16 }
  0x17   : > { %334 = vmatpush.msra.mxu0 %v309_v16  ;;  %354 = vmatpush.msra.mxu1 %v310_v17  ;;  %v288_v28 = vld [vmem:[%s1110_s4 + $0x28] sm:$0xff]  ;;  %v303_v29 = vld [vmem:[%s1109_s3 + $0x10] sm:$0xff]  ;;  %v304_v30 = vld [vmem:[%s1109_s3 + $0x18] sm:$0xff] }
  0x18   : > { %382 = vmatpush.msra.mxu2 %v291_v18  ;;  %402 = vmatpush.msra.mxu3 %v292_v19  ;;  %v285_v31 = vld [vmem:[%s1110_s4 + $0x10] sm:$0xff]  ;;  %v286_v32 = vld [vmem:[%s1110_s4 + $0x18] sm:$0xff]  ;;  %v301_v34 = vld [vmem:[%s1109_s3] sm:$0xff] }
  0x19   : > { %335 = vmatpush.msra.mxu0 %v307_v20  ;;  %355 = vmatpush.msra.mxu1 %v308_v21  ;;  %v302_v35 = vld [vmem:[%s1109_s3 + $0x8] sm:$0xff]  ;;  %v283_v36 = vld [vmem:[%s1110_s4] sm:$0xff]  ;;  %v665_v39 = vld [vmem:[%s1109_s3 + $0x110] sm:$0xff] }
  0x1a   : > { %383 = vmatpush.msra.mxu2 %v289_v22  ;;  %403 = vmatpush.msra.mxu3 %v290_v23  ;;  %v284_v38 = vld [vmem:[%s1110_s4 + $0x8] sm:$0xff]  ;;  %v666_v40 = vld [vmem:[%s1109_s3 + $0x118] sm:$0xff]  ;;  %v685_v42 = vld [vmem:[%s1109_s3 + $0x1a0] sm:$0xff] }
  0x1b   : > { %336 = vmatpush.msra.mxu0 %v305_v25  ;;  %356 = vmatpush.msra.mxu1 %v306_v26  ;;  %v686_v43 = vld [vmem:[%s1109_s3 + $0x1a8] sm:$0xff]  ;;  %v663_v44 = vld [vmem:[%s1109_s3 + $0x100] sm:$0xff]  ;;  %v683_v49 = vld [vmem:[%s1109_s3 + $0x190] sm:$0xff] }
  0x1c   : > { %384 = vmatpush.msra.mxu2 %v287_v27  ;;  %404 = vmatpush.msra.mxu3 %v288_v28  ;;  %v664_v45 = vld [vmem:[%s1109_s3 + $0x108] sm:$0xff]  ;;  %v249_v46 = vld [vmem:[%s248_s28] sm:$0xff]  ;;  %v684_v51 = vld [vmem:[%s1109_s3 + $0x198] sm:$0xff] }
  0x1d   : > { %337 = vmatpush.msra.mxu0 %v303_v29  ;;  %357 = vmatpush.msra.mxu1 %v304_v30  ;;  %v250_v47 = vld [vmem:[%s248_s28 + $0x8] sm:$0x3]  ;;  %v732_v50 = vld [vmem:[%s1107_s1] ss:$0 sm:$0xff]  ;;  %v661_v52 = vld [vmem:[%s1109_s3 + $0xf0] sm:$0xff]  ;;  %v366_v56 = vrot.slane %v249_v46, 1 }
  0x1e   : > { %385 = vmatpush.msra.mxu2 %v285_v31  ;;  %405 = vmatpush.msra.mxu3 %v286_v32  ;;  %v662_v53 = vld [vmem:[%s1109_s3 + $0xf8] sm:$0xff]  ;;  %v256_v55 = vmul.f32 %v732_v50, %v250_v47  ;;  %v367_v57 = vrot.slane %v250_v47, 1  ;;  %v255_v58 = vmul.f32 %v732_v50, %v249_v46  ;;  %v733_v59 = vld [vmem:[%s1108_s2] ss:$0 sm:$0xff]  ;;  %v682_v61 = vld [vmem:[%s1109_s3 + $0x188] sm:$0xff] }
  0x1f   : > { %338 = vmatpush.msra.mxu0 %v301_v34  ;;  %358 = vmatpush.msra.mxu1 %v302_v35  ;;  %v681_v60 = vld [vmem:[%s1109_s3 + $0x180] sm:$0xff]  ;;  %v660_v63 = vld [vmem:[%s1109_s3 + $0xe8] sm:$0xff]  ;;  %v679_v2 = vld [vmem:[%s1109_s3 + $0x170] sm:$0xff] }
  0x20   : > { %386 = vmatpush.msra.mxu2 %v283_v36  ;;  %406 = vmatpush.msra.mxu3 %v284_v38  ;;  %v659_v62 = vld [vmem:[%s1109_s3 + $0xe0] sm:$0xff]  ;;  %v261_v0 = vadd.f32 %v733_v59, %v255_v58  ;;  %v262_v1 = vadd.f32 %v733_v59, %v256_v55  ;;  %v680_v3 = vld [vmem:[%s1109_s3 + $0x178] sm:$0xff]  ;;  %v368_v4 = vsel %vm365_vm0, %v366_v56, %v367_v57  ;;  %vm275_vm6 = vmand %vm271_vm1, %vm273_vm2 }
  0x21   : > { %443 = vmatpush.msrb.mxu0 %v665_v39  ;;  %463 = vmatpush.msrb.mxu1 %v666_v40  ;;  %v657_v6 = vld [vmem:[%s1109_s3 + $0xd0] sm:$0xff]  ;;  %v658_v7 = vld [vmem:[%s1109_s3 + $0xd8] sm:$0xff]  ;;  %v677_v9 = vld [vmem:[%s1109_s3 + $0x160] sm:$0xff] }
  0x22   : > { %510 = vmatpush.msrb.mxu2 %v685_v42  ;;  %530 = vmatpush.msrb.mxu3 %v686_v43  ;;  %v263_v5 = vmax.f32 %v261_v0, 0.0  ;;  %v264_v8 = vmax.f32 %v262_v1, 0.0  ;;  %v678_v10 = vld [vmem:[%s1109_s3 + $0x168] sm:$0xff]  ;;  %vm276_vm7 = vmand %vm272_vm3, %vm274_vm4  ;;  %v655_v12 = vld [vmem:[%s1109_s3 + $0xc0] sm:$0xff] }
  0x23   : > { %444 = vmatpush.msrb.mxu0 %v663_v44  ;;  %464 = vmatpush.msrb.mxu1 %v664_v45  ;;  %v656_v13 = vld [vmem:[%s1109_s3 + $0xc8] sm:$0xff]  ;;  %v675_v14 = vld [vmem:[%s1109_s3 + $0x150] sm:$0xff]  ;;  %v676_v15 = vld [vmem:[%s1109_s3 + $0x158] sm:$0xff] }
  0x24   : > { %511 = vmatpush.msrb.mxu2 %v683_v49  ;;  %531 = vmatpush.msrb.mxu3 %v684_v51  ;;  %v281_v11 = vsel %vm275_vm6, %v263_v5, 0.0  ;;  %v282_v16 = vsel %vm276_vm7, %v264_v8, 0.0  ;;  %v653_v17 = vld [vmem:[%s1109_s3 + $0xb0] sm:$0xff]  ;;  %v654_v18 = vld [vmem:[%s1109_s3 + $0xb8] sm:$0xff]  ;;  %v673_v19 = vld [vmem:[%s1109_s3 + $0x140] sm:$0xff] }
  0x25   : > { %445 = vmatpush.msrb.mxu0 %v661_v52  ;;  %465 = vmatpush.msrb.mxu1 %v662_v53  ;;  %v674_v20 = vld [vmem:[%s1109_s3 + $0x148] sm:$0xff]  ;;  %v431_v21 = vrot.slane %v281_v11, 1  ;;  %v651_v22 = vld [vmem:[%s1109_s3 + $0xa0] sm:$0xff]  ;;  %v432_v24 = vrot.slane %v282_v16, 1  ;;  %v498_v25 = vrot.slane %v281_v11, 2  ;;  %v671_v26 = vld [vmem:[%s1109_s3 + $0x130] sm:$0xff] }
  0x26   : > { %512 = vmatpush.msrb.mxu2 %v681_v60  ;;  %532 = vmatpush.msrb.mxu3 %v682_v61  ;;  %v652_v23 = vld [vmem:[%s1109_s3 + $0xa8] sm:$0xff]  ;;  %v672_v27 = vld [vmem:[%s1109_s3 + $0x138] sm:$0xff]  ;;  %v499_v28 = vrot.slane %v282_v16, 2  ;;  %v649_v29 = vld [vmem:[%s1109_s3 + $0x90] sm:$0xff] }
  0x27   : > { %446 = vmatpush.msrb.mxu0 %v659_v62  ;;  %466 = vmatpush.msrb.mxu1 %v660_v63  ;;  %v650_v30 = vld [vmem:[%s1109_s3 + $0x98] sm:$0xff]  ;;  %v669_v31 = vld [vmem:[%s1109_s3 + $0x120] sm:$0xff]  ;;  %v670_v32 = vld [vmem:[%s1109_s3 + $0x128] sm:$0xff]  ;;  %v433_v33 = vsel %vm365_vm0, %v431_v21, %v432_v24 }
  0x28   : > { %513 = vmatpush.msrb.mxu2 %v679_v2  ;;  %533 = vmatpush.msrb.mxu3 %v680_v3  ;;  %v500_v34 = vsel %vm497_vm8, %v498_v25, %v499_v28 }
  0x29   : > { %647 = vmatmul.msk.f32.vlgmr.msra.gmra.mxu2 %vm319_vm5, %v368_v4  ;;  %648 = vmatmul.msk.f32.vlgmr.msra.gmra.mxu3 %vm319_vm5, %v368_v4 }
  0x2a   : > { %447 = vmatpush.msrb.mxu0 %v657_v6  ;;  %467 = vmatpush.msrb.mxu1 %v658_v7 }
  0x2b   : > { %514 = vmatpush.msrb.mxu2 %v677_v9  ;;  %534 = vmatpush.msrb.mxu3 %v678_v10 }
  0x2c   : > { %645 = vmatmul.msk.f32.vlgmr.msra.gmra.mxu0 %vm319_vm5, %v281_v11  ;;  %646 = vmatmul.msk.f32.vlgmr.msra.gmra.mxu1 %vm319_vm5, %v281_v11 }
  0x2d   : > { %448 = vmatpush.msrb.mxu0 %v655_v12  ;;  %468 = vmatpush.msrb.mxu1 %v656_v13 }
  0x2e   : > { %515 = vmatpush.msrb.mxu2 %v675_v14  ;;  %535 = vmatpush.msrb.mxu3 %v676_v15 }
  0x2f   : > { %449 = vmatpush.msrb.mxu0 %v653_v17  ;;  %469 = vmatpush.msrb.mxu1 %v654_v18 }
  0x30   : > { %516 = vmatpush.msrb.mxu2 %v673_v19  ;;  %536 = vmatpush.msrb.mxu3 %v674_v20 }
  0x31   : > { %450 = vmatpush.msrb.mxu0 %v651_v22  ;;  %470 = vmatpush.msrb.mxu1 %v652_v23 }
  0x32   : > { %517 = vmatpush.msrb.mxu2 %v671_v26  ;;  %537 = vmatpush.msrb.mxu3 %v672_v27 }
  0x33   : > { %451 = vmatpush.msrb.mxu0 %v649_v29  ;;  %471 = vmatpush.msrb.mxu1 %v650_v30 }
  0x34   : > { %518 = vmatpush.msrb.mxu2 %v669_v31  ;;  %538 = vmatpush.msrb.mxu3 %v670_v32 }
  0x35   : > { %667 = vmatmul.msk.f32.vlgmr.msrb.gmra.mxu0 %vm319_vm5, %v433_v33  ;;  %668 = vmatmul.msk.f32.vlgmr.msrb.gmra.mxu1 %vm319_vm5, %v433_v33 }
  0x36   : > { %687 = vmatmul.msk.f32.vlgmr.msrb.gmra.mxu2 %vm319_vm5, %v500_v34  ;;  %688 = vmatmul.msk.f32.vlgmr.msrb.gmra.mxu3 %vm319_vm5, %v500_v34 }
  0xa9   : > { %v340_v35 = vpop.f32.mrf.mxu0  ;;  %v360_v36 = vpop.f32.mrf.mxu1 }
  0xac   : > { %v388_v37 = vpop.f32.mrf.mxu2  ;;  %v408_v38 = vpop.f32.mrf.mxu3 }
  0xad   : > { %v389_v41 = vadd.f32 %v388_v37, %v340_v35  ;;  %v409_v42 = vadd.f32 %v408_v38, %v360_v36 }
  0xb2   : > { %v453_v39 = vpop.f32.mrf.mxu0  ;;  %v473_v40 = vpop.f32.mrf.mxu1 }
  0xb3   : > { %v476_v43 = vadd.f32 %v453_v39, %v389_v41  ;;  %v477_v44 = vadd.f32 %v473_v40, %v409_v42 }
  0xb9   : > { %v520_v45 = vpop.f32.mrf.mxu2  ;;  %v540_v46 = vpop.f32.mrf.mxu3 }
  0xba   : > { %v543_v47 = vadd.f32 %v520_v45, %v476_v43  ;;  %v544_v48 = vadd.f32 %v540_v46, %v477_v44 }
  0xbc   : > { %545 = vst [vmem:[%s246_s16] sm:$0xff] %v543_v47 }
  0xbd   : > { %546 = vst [vmem:[%s246_s16 + $0x8] sm:$0xff] %v544_v48 }
  0xbe PF: > { %s15_s22 = sadd.s32 1, %s772_s22   ;;  %s1112_s18 = smov %s764_s20 }
  0xbf   : > { %p12_p7 = scmp.ge.s32.totalorder %s15_s22, 6   ;;  %s1113_s19 = smov %s768_s21 }
  0xc0   : > { %s1114_s20 = smov %s1117_s23  ;;  %s1115_s21 = smov %s1121_s24 }
  0xc1   :  { %14 = sbr.rel (!%p12_p7) target bundleno = 3 (0x3), region = 73 }

</bundles_post_ra>
